<compile_context>
chip_gen: v6e
topology: v6e:2x2x1
jax: 0.10.0
libtpu: 0.0.40
codegen_flags: <defaults>
</compile_context>

<pallas_src>
import functools
import math

import numpy as np
import jax
import jax.numpy as jnp
from jax import lax
from jax.experimental import pallas as pl
from jax.experimental.pallas import tpu as pltpu

_EPS = 1e-12
_PI = math.pi


# ----------------------------- small in-kernel math helpers -----------------------------
# Vector components are kept as separate (TB, M) arrays so everything is pure
# element-wise VPU/EUP work; no cross-lane shuffles needed.

def _sub(a, b):
    return tuple(ai - bi for ai, bi in zip(a, b))


def _dot(a, b):
    return a[0] * b[0] + a[1] * b[1] + a[2] * b[2]


def _cross(a, b):
    return (a[1] * b[2] - a[2] * b[1],
            a[2] * b[0] - a[0] * b[2],
            a[0] * b[1] - a[1] * b[0])


def _scale(a, s):
    return (a[0] * s, a[1] * s, a[2] * s)


def _atan_pos(x):
    # float32 atan for x >= 0, Cephes-style range reduction + degree-9 polynomial.
    # Kept hand-rolled (guaranteed to lower in Mosaic); divisions kept exact for
    # angle accuracy — they route through the EUP reciprocal path anyway.
    t3p8 = 2.414213562373095   # tan(3*pi/8)
    tp8 = 0.4142135623730951   # tan(pi/8)
    big = x > t3p8
    mid = (x > tp8) & (~big)
    y0 = jnp.where(big, 0.5 * _PI, jnp.where(mid, 0.25 * _PI, 0.0))
    xr = jnp.where(big, -1.0 / jnp.maximum(x, _EPS),
                   jnp.where(mid, (x - 1.0) / (x + 1.0), x))
    z = xr * xr
    p = (((8.05374449538e-2 * z - 1.38776856032e-1) * z
          + 1.99777106478e-1) * z - 3.33329491539e-1) * z * xr + xr
    return y0 + p


def _atan2(y, x):
    ax = jnp.abs(x)
    ay = jnp.abs(y)
    swap = ay > ax
    num = jnp.where(swap, ax, ay)
    den = jnp.maximum(jnp.where(swap, ay, ax), _EPS)
    r = _atan_pos(num / den)
    r = jnp.where(swap, 0.5 * _PI - r, r)
    r = jnp.where(x < 0.0, _PI - r, r)
    r = jnp.where(y < 0.0, -r, r)
    return r


# ----------------------------------- Pallas kernel -----------------------------------

def _ic_kernel(x_ref, bonds_ref, ang_ref, tor_ref, ld_ref, *, m_rows):
    """Hot path: bonds / angles / torsions (+ per-row log-det) for TB batch rows.

    x_ref     : (3, TB, N)  xyz-major positions; batch on sublanes, atoms on lanes
    bonds_ref : (TB, M)     bond lengths
    ang_ref   : (TB, M)     normalized angles  (angle / pi)
    tor_ref   : (TB, M)     normalized torsions ((torsion + pi) / (2*pi))
    ld_ref    : (TB, 1)     sum over z-matrix rows of -(2 log b + log sin(angle))
    """
    x = x_ref[...]                          # (3, TB, N)
    xx, xy, xz = x[0], x[1], x[2]           # each (TB, N)

    def atoms(k):
        # atoms k .. k+M-1 for all batch rows (shifted static lane slices)
        return (xx[:, k:k + m_rows], xy[:, k:k + m_rows], xz[:, k:k + m_rows])

    pd = atoms(0)   # torsion_ref = i-3
    pc = atoms(1)   # angle_ref   = i-2
    pb = atoms(2)   # bond_ref    = i-1
    pa = atoms(3)   # atom        = i

    # ---- bonds: |atom - bond_ref| -----------------------------------------------------
    vab = _sub(pa, pb)
    d2ab = _dot(vab, vab)
    bonds = jnp.sqrt(jnp.maximum(d2ab, _EPS))

    # ---- angles at bond_ref between atom and angle_ref --------------------------------
    vbc = _sub(pc, pb)
    d2bc = _dot(vbc, vbc)
    cr = _cross(vab, vbc)
    sin_num = jnp.sqrt(jnp.maximum(_dot(cr, cr), _EPS))
    cos_num = _dot(vab, vbc)
    ang = _atan2(sin_num, cos_num)                      # in [0, pi]

    # ---- torsions (atom, bond_ref, angle_ref, torsion_ref); reuse vab/vbc -------------
    b2 = _sub(pd, pc)
    inv_nb1 = lax.rsqrt(jnp.maximum(d2bc, _EPS))        # EUP rsqrt, no divide
    b1n = _scale(vbc, inv_nb1)
    v = _sub(vab, _scale(b1n, _dot(vab, b1n)))
    w = _sub(b2, _scale(b1n, _dot(b2, b1n)))
    tor = _atan2(_dot(_cross(b1n, v), w), _dot(v, w))   # in (-pi, pi]

    # ---- single full-tile stores (lane-dense, no per-sublane partial writes) ----------
    bonds_ref[...] = bonds
    ang_ref[...] = ang * (1.0 / _PI)
    tor_ref[...] = (tor + _PI) * (1.0 / (2.0 * _PI))

    # ---- per-row Jacobian (Cartesian -> IC):  -(2 log b + log sin(angle)) --------------
    # sin(angle) = sin_num / (b * |vbc|)  =>  contribution = -(log b + log sin_num - log|vbc|)
    log_b = jnp.log(bonds)
    log_sin_num = jnp.log(sin_num)
    log_nbc = 0.5 * jnp.log(jnp.maximum(d2bc, _EPS))
    ld_rows = -(log_b + log_sin_num - log_nbc)
    ld_ref[...] = jnp.sum(ld_rows, axis=-1, keepdims=True)


# ----------------------------------- wrapper (glue) -----------------------------------

def build_naive_zmatrix(n_atoms):
    """Deterministic naive chain z-matrix: [atom, bond_ref, angle_ref, torsion_ref]."""
    rows = [[i, i - 1, i - 2, i - 3] for i in range(3, n_atoms)]
    return np.asarray(rows, dtype=np.int32)                            # (N-3, 4)


def _round_up(a, b):
    return ((a + b - 1) // b) * b


@functools.partial(jax.jit, static_argnames=("n_atoms", "batch_tile"))
def _forward_impl(x_flat, n_atoms, batch_tile):
    x_flat = x_flat.astype(jnp.float32)
    B = x_flat.shape[0]
    N = n_atoms
    M = N - 3
    x = x_flat.reshape(B, N, 3)

    # ------------------ global frame (first 3 atoms): O(B), plain JAX -------------------
    X0, X1, X2 = x[:, 0, :], x[:, 1, :], x[:, 2, :]                     # each [B, 3]
    v01 = X1 - X0
    d01 = jnp.sqrt(jnp.maximum(jnp.sum(v01 * v01, -1), _EPS))           # [B]
    u = v01 / d01[:, None]
    sin_theta = jnp.sqrt(jnp.maximum(u[:, 0] ** 2 + u[:, 1] ** 2, 0.0))
    theta = jnp.arctan2(sin_theta, u[:, 2])                             # polar   [0, pi]
    phi = jnp.arctan2(u[:, 1], u[:, 0])                                 # azimuth (-pi, pi]

    v12 = X2 - X1
    d12 = jnp.sqrt(jnp.maximum(jnp.sum(v12 * v12, -1), _EPS))
    w10 = X0 - X1
    cr012 = jnp.cross(w10, v12)
    s012 = jnp.sqrt(jnp.maximum(jnp.sum(cr012 * cr012, -1), _EPS))
    a012 = jnp.arctan2(s012, jnp.sum(w10 * v12, -1))
    sin_a012 = s012 / jnp.maximum(d01 * d12, _EPS)

    # spin of atom2 about the 0->1 axis relative to the global z axis
    # TODO(synk): bgflow uses its own Euler-angle convention for R; this spherical
    # decomposition has the same dof count / Jacobian structure but may differ in convention.
    wproj = v12 - u * jnp.sum(v12 * u, -1, keepdims=True)
    ez = jnp.broadcast_to(jnp.asarray([0.0, 0.0, 1.0], jnp.float32), u.shape)
    rref = ez - u * u[:, 2:3]
    gamma = jnp.arctan2(jnp.sum(u * jnp.cross(rref, wproj), -1),
                        jnp.sum(rref * wproj, -1))

    ld_global = -(2.0 * jnp.log(jnp.maximum(d01, _EPS))
                  + jnp.log(jnp.maximum(sin_theta, _EPS))
                  + 2.0 * jnp.log(jnp.maximum(d12, _EPS))
                  + jnp.log(jnp.maximum(sin_a012, _EPS)))
    # normalize_angles=True constants: (M+2) angle-like dofs, (M+2) torsion-like dofs
    ld_norm = -((M + 2) * math.log(_PI) + (M + 2) * math.log(2.0 * _PI))

    # ------------------ hot path: z-matrix rows in the Pallas kernel --------------------
    TB = int(min(batch_tile, _round_up(B, 8)))      # batch rows per grid step (mult. of 8)
    B_pad = _round_up(B, TB)
    xc = jnp.transpose(x, (2, 0, 1))                # [3, B, N]  (xyz major, batch on sublanes)
    if B_pad != B:
        xc = jnp.pad(xc, ((0, 0), (0, B_pad - B), (0, 0)))

    kernel = pl.pallas_call(
        functools.partial(_ic_kernel, m_rows=M),
        out_shape=(jax.ShapeDtypeStruct((B_pad, M), jnp.float32),
                   jax.ShapeDtypeStruct((B_pad, M), jnp.float32),
                   jax.ShapeDtypeStruct((B_pad, M), jnp.float32),
                   jax.ShapeDtypeStruct((B_pad, 1), jnp.float32)),
        grid_spec=pltpu.PrefetchScalarGridSpec(
            num_scalar_prefetch=0,
            grid=(B_pad // TB,),
            in_specs=[pl.BlockSpec((3, TB, N), lambda b: (0, b, 0))],
            out_specs=[pl.BlockSpec((TB, M), lambda b: (b, 0)),
                       pl.BlockSpec((TB, M), lambda b: (b, 0)),
                       pl.BlockSpec((TB, M), lambda b: (b, 0)),
                       pl.BlockSpec((TB, 1), lambda b: (b, 0))],
        ),
        compiler_params=pltpu.CompilerParams(dimension_semantics=("parallel",)),
    )
    bonds, ang_n, tor_n, ld_ic = kernel(xc)
    bonds, ang_n, tor_n = bonds[:B], ang_n[:B], tor_n[:B]
    ld_ic = ld_ic[:B, 0]

    # ------------------ assemble final layout + total log|det J| ------------------------
    theta_n = theta / _PI
    a012_n = a012 / _PI
    phi_n = (phi + _PI) / (2.0 * _PI)
    gamma_n = (gamma + _PI) / (2.0 * _PI)

    bonds_all = jnp.concatenate([d01[:, None], d12[:, None], bonds], axis=-1)   # [B, M+2]
    angles_all = jnp.concatenate([a012_n[:, None], ang_n], axis=-1)             # [B, M+1]
    R = jnp.stack([phi_n, theta_n, gamma_n], axis=-1)                           # [B, 3]
    out = jnp.concatenate([bonds_all, angles_all, tor_n, X0, R], axis=-1)       # [B, 3N]
    ldj = ld_ic + ld_global + ld_norm                                           # [B]
    return out, ldj


def global_internal_coordinate_forward(x_flat, zmat=None, batch_tile=128):
    """Forward pass: Cartesian [B, 3N] -> ([B, 3N] internal coords, [B] log|det J|)."""
    x_flat = jnp.asarray(x_flat, jnp.float32)
    N = x_flat.shape[1] // 3
    assert N >= 4, "need at least 4 atoms"
    if zmat is not None:
        # TODO(synk): kernel assumes the naive-chain z-matrix [i, i-1, i-2, i-3]
        # (bgmol ZMatrixFactory.build_naive on a chain); arbitrary z-matrices would
        # need a gather path instead of shifted in-kernel slices.
        assert np.array_equal(np.asarray(zmat), build_naive_zmatrix(N)), \
            "only the naive chain z-matrix is supported by this kernel"
    return _forward_impl(x_flat, N, int(batch_tile))


if __name__ == "__main__":
    key = jax.random.PRNGKey(0)
    B, N = 2, 8                       # 8 atoms -> input [2, 24]
    zmat = build_naive_zmatrix(N)     # (5, 4), deterministic "naive" z-matrix

    x = jax.random.normal(key, (B, 3 * N), dtype=jnp.float32)

    out, ldj = global_internal_coordinate_forward(x, zmat)
    out, ldj = jax.block_until_ready((out, ldj))

    assert out.shape == (B, 3 * N), out.shape
    assert ldj.shape == (B,), ldj.shape
    assert bool(jnp.all(jnp.isfinite(out))) and bool(jnp.all(jnp.isfinite(ldj)))
    print("KERNEL_OK")
</pallas_src>

<mosaic_0001>
module attributes {stable_mosaic.version = 11 : i64} {
  func.func @_ic_kernel(%arg0: i32, %arg1: memref<3x8x8xf32, #tpu.memory_space<vmem>>, %arg2: memref<8x5xf32, #tpu.memory_space<vmem>>, %arg3: memref<8x5xf32, #tpu.memory_space<vmem>>, %arg4: memref<8x5xf32, #tpu.memory_space<vmem>>, %arg5: memref<8x1xf32, #tpu.memory_space<vmem>>) attributes {dimension_semantics = [#tpu.dimension_semantics<parallel>], iteration_bounds = array<i64: 1>, scalar_prefetch = 0 : i64, scratch_operands = 0 : i64, tpu.core_type = #tpu.core_type<tc>, window_params = [{transform_indices = @transform_0, window_bounds = array<i64: 3, 8, 8>}, {transform_indices = @transform_1, window_bounds = array<i64: 8, 5>}, {transform_indices = @transform_2, window_bounds = array<i64: 8, 5>}, {transform_indices = @transform_3, window_bounds = array<i64: 8, 5>}, {transform_indices = @transform_4, window_bounds = array<i64: 8, 1>}]} {
    %c0 = arith.constant 0 : index
    %c0_0 = arith.constant 0 : index
    %c0_1 = arith.constant 0 : index
    %0 = vector.load %arg1[%c0, %c0_0, %c0_1] : memref<3x8x8xf32, #tpu.memory_space<vmem>>, vector<3x8x8xf32>
    %1 = vector.extract_strided_slice %0 {offsets = [0, 0, 0], sizes = [1, 8, 8], strides = [1, 1, 1]} : vector<3x8x8xf32> to vector<1x8x8xf32>
    %2 = vector.shape_cast %1 : vector<1x8x8xf32> to vector<8x8xf32>
    %3 = vector.extract_strided_slice %0 {offsets = [1, 0, 0], sizes = [1, 8, 8], strides = [1, 1, 1]} : vector<3x8x8xf32> to vector<1x8x8xf32>
    %4 = vector.shape_cast %3 : vector<1x8x8xf32> to vector<8x8xf32>
    %5 = vector.extract_strided_slice %0 {offsets = [2, 0, 0], sizes = [1, 8, 8], strides = [1, 1, 1]} : vector<3x8x8xf32> to vector<1x8x8xf32>
    %6 = vector.shape_cast %5 : vector<1x8x8xf32> to vector<8x8xf32>
    %7 = vector.extract_strided_slice %2 {offsets = [0, 0], sizes = [8, 5], strides = [1, 1]} : vector<8x8xf32> to vector<8x5xf32>
    %8 = vector.extract_strided_slice %4 {offsets = [0, 0], sizes = [8, 5], strides = [1, 1]} : vector<8x8xf32> to vector<8x5xf32>
    %9 = vector.extract_strided_slice %6 {offsets = [0, 0], sizes = [8, 5], strides = [1, 1]} : vector<8x8xf32> to vector<8x5xf32>
    %10 = vector.extract_strided_slice %2 {offsets = [0, 1], sizes = [8, 5], strides = [1, 1]} : vector<8x8xf32> to vector<8x5xf32>
    %11 = vector.extract_strided_slice %4 {offsets = [0, 1], sizes = [8, 5], strides = [1, 1]} : vector<8x8xf32> to vector<8x5xf32>
    %12 = vector.extract_strided_slice %6 {offsets = [0, 1], sizes = [8, 5], strides = [1, 1]} : vector<8x8xf32> to vector<8x5xf32>
    %13 = vector.extract_strided_slice %2 {offsets = [0, 2], sizes = [8, 5], strides = [1, 1]} : vector<8x8xf32> to vector<8x5xf32>
    %14 = vector.extract_strided_slice %4 {offsets = [0, 2], sizes = [8, 5], strides = [1, 1]} : vector<8x8xf32> to vector<8x5xf32>
    %15 = vector.extract_strided_slice %6 {offsets = [0, 2], sizes = [8, 5], strides = [1, 1]} : vector<8x8xf32> to vector<8x5xf32>
    %16 = vector.extract_strided_slice %2 {offsets = [0, 3], sizes = [8, 5], strides = [1, 1]} : vector<8x8xf32> to vector<8x5xf32>
    %17 = vector.extract_strided_slice %4 {offsets = [0, 3], sizes = [8, 5], strides = [1, 1]} : vector<8x8xf32> to vector<8x5xf32>
    %18 = vector.extract_strided_slice %6 {offsets = [0, 3], sizes = [8, 5], strides = [1, 1]} : vector<8x8xf32> to vector<8x5xf32>
    %19 = arith.subf %16, %13 : vector<8x5xf32>
    %20 = arith.subf %17, %14 : vector<8x5xf32>
    %21 = arith.subf %18, %15 : vector<8x5xf32>
    %22 = arith.mulf %19, %19 : vector<8x5xf32>
    %23 = arith.mulf %20, %20 : vector<8x5xf32>
    %24 = arith.addf %22, %23 : vector<8x5xf32>
    %25 = arith.mulf %21, %21 : vector<8x5xf32>
    %26 = arith.addf %24, %25 : vector<8x5xf32>
    %cst = arith.constant 9.99999996E-13 : f32
    %27 = vector.broadcast %cst : f32 to vector<8x5xf32>
    %28 = arith.maximumf %26, %27 : vector<8x5xf32>
    %29 = math.sqrt %28 : vector<8x5xf32>
    %30 = arith.subf %10, %13 : vector<8x5xf32>
    %31 = arith.subf %11, %14 : vector<8x5xf32>
    %32 = arith.subf %12, %15 : vector<8x5xf32>
    %33 = arith.mulf %30, %30 : vector<8x5xf32>
    %34 = arith.mulf %31, %31 : vector<8x5xf32>
    %35 = arith.addf %33, %34 : vector<8x5xf32>
    %36 = arith.mulf %32, %32 : vector<8x5xf32>
    %37 = arith.addf %35, %36 : vector<8x5xf32>
    %38 = arith.mulf %20, %32 : vector<8x5xf32>
    %39 = arith.mulf %21, %31 : vector<8x5xf32>
    %40 = arith.subf %38, %39 : vector<8x5xf32>
    %41 = arith.mulf %21, %30 : vector<8x5xf32>
    %42 = arith.mulf %19, %32 : vector<8x5xf32>
    %43 = arith.subf %41, %42 : vector<8x5xf32>
    %44 = arith.mulf %19, %31 : vector<8x5xf32>
    %45 = arith.mulf %20, %30 : vector<8x5xf32>
    %46 = arith.subf %44, %45 : vector<8x5xf32>
    %47 = arith.mulf %40, %40 : vector<8x5xf32>
    %48 = arith.mulf %43, %43 : vector<8x5xf32>
    %49 = arith.addf %47, %48 : vector<8x5xf32>
    %50 = arith.mulf %46, %46 : vector<8x5xf32>
    %51 = arith.addf %49, %50 : vector<8x5xf32>
    %cst_2 = arith.constant 9.99999996E-13 : f32
    %52 = vector.broadcast %cst_2 : f32 to vector<8x5xf32>
    %53 = arith.maximumf %51, %52 : vector<8x5xf32>
    %54 = math.sqrt %53 : vector<8x5xf32>
    %55 = arith.mulf %19, %30 : vector<8x5xf32>
    %56 = arith.mulf %20, %31 : vector<8x5xf32>
    %57 = arith.addf %55, %56 : vector<8x5xf32>
    %58 = arith.mulf %21, %32 : vector<8x5xf32>
    %59 = arith.addf %57, %58 : vector<8x5xf32>
    %60 = math.absf %59 : vector<8x5xf32>
    %61 = math.absf %54 : vector<8x5xf32>
    %62 = arith.cmpf ogt, %61, %60 : vector<8x5xf32>
    %63 = arith.select %62, %60, %61 : vector<8x5xi1>, vector<8x5xf32>
    %64 = arith.select %62, %61, %60 : vector<8x5xi1>, vector<8x5xf32>
    %cst_3 = arith.constant 9.99999996E-13 : f32
    %65 = vector.broadcast %cst_3 : f32 to vector<8x5xf32>
    %66 = arith.maximumf %64, %65 : vector<8x5xf32>
    %67 = arith.divf %63, %66 : vector<8x5xf32>
    %cst_4 = arith.constant 2.41421366 : f32
    %68 = vector.broadcast %cst_4 : f32 to vector<8x5xf32>
    %69 = arith.cmpf ogt, %67, %68 : vector<8x5xf32>
    %cst_5 = arith.constant 0.414213568 : f32
    %70 = vector.broadcast %cst_5 : f32 to vector<8x5xf32>
    %71 = arith.cmpf ogt, %67, %70 : vector<8x5xf32>
    %cst_6 = arith.constant dense<true> : vector<8x5xi1>
    %72 = arith.xori %69, %cst_6 : vector<8x5xi1>
    %73 = arith.andi %71, %72 : vector<8x5xi1>
    %cst_7 = arith.constant 0.785398185 : f32
    %cst_8 = arith.constant 0.000000e+00 : f32
    %74 = vector.broadcast %cst_7 : f32 to vector<8x5xf32>
    %75 = vector.broadcast %cst_8 : f32 to vector<8x5xf32>
    %76 = arith.select %73, %74, %75 : vector<8x5xi1>, vector<8x5xf32>
    %cst_9 = arith.constant 1.57079637 : f32
    %77 = vector.broadcast %cst_9 : f32 to vector<8x5xf32>
    %78 = arith.select %69, %77, %76 : vector<8x5xi1>, vector<8x5xf32>
    %cst_10 = arith.constant 9.99999996E-13 : f32
    %79 = vector.broadcast %cst_10 : f32 to vector<8x5xf32>
    %80 = arith.maximumf %67, %79 : vector<8x5xf32>
    %cst_11 = arith.constant -1.000000e+00 : f32
    %81 = vector.broadcast %cst_11 : f32 to vector<8x5xf32>
    %82 = arith.divf %81, %80 : vector<8x5xf32>
    %cst_12 = arith.constant 1.000000e+00 : f32
    %83 = vector.broadcast %cst_12 : f32 to vector<8x5xf32>
    %84 = arith.subf %67, %83 : vector<8x5xf32>
    %cst_13 = arith.constant 1.000000e+00 : f32
    %85 = vector.broadcast %cst_13 : f32 to vector<8x5xf32>
    %86 = arith.addf %67, %85 : vector<8x5xf32>
    %87 = arith.divf %84, %86 : vector<8x5xf32>
    %88 = arith.select %73, %87, %67 : vector<8x5xi1>, vector<8x5xf32>
    %89 = arith.select %69, %82, %88 : vector<8x5xi1>, vector<8x5xf32>
    %90 = arith.mulf %89, %89 : vector<8x5xf32>
    %cst_14 = arith.constant 0.0805374458 : f32
    %91 = vector.broadcast %cst_14 : f32 to vector<8x5xf32>
    %92 = arith.mulf %91, %90 : vector<8x5xf32>
    %cst_15 = arith.constant 0.138776854 : f32
    %93 = vector.broadcast %cst_15 : f32 to vector<8x5xf32>
    %94 = arith.subf %92, %93 : vector<8x5xf32>
    %95 = arith.mulf %94, %90 : vector<8x5xf32>
    %cst_16 = arith.constant 0.199777111 : f32
    %96 = vector.broadcast %cst_16 : f32 to vector<8x5xf32>
    %97 = arith.addf %95, %96 : vector<8x5xf32>
    %98 = arith.mulf %97, %90 : vector<8x5xf32>
    %cst_17 = arith.constant 0.333329499 : f32
    %99 = vector.broadcast %cst_17 : f32 to vector<8x5xf32>
    %100 = arith.subf %98, %99 : vector<8x5xf32>
    %101 = arith.mulf %100, %90 : vector<8x5xf32>
    %102 = arith.mulf %101, %89 : vector<8x5xf32>
    %103 = arith.addf %102, %89 : vector<8x5xf32>
    %104 = arith.addf %78, %103 : vector<8x5xf32>
    %cst_18 = arith.constant 1.57079637 : f32
    %105 = vector.broadcast %cst_18 : f32 to vector<8x5xf32>
    %106 = arith.subf %105, %104 : vector<8x5xf32>
    %107 = arith.select %62, %106, %104 : vector<8x5xi1>, vector<8x5xf32>
    %cst_19 = arith.constant 0.000000e+00 : f32
    %108 = vector.broadcast %cst_19 : f32 to vector<8x5xf32>
    %109 = arith.cmpf olt, %59, %108 : vector<8x5xf32>
    %cst_20 = arith.constant 3.14159274 : f32
    %110 = vector.broadcast %cst_20 : f32 to vector<8x5xf32>
    %111 = arith.subf %110, %107 : vector<8x5xf32>
    %112 = arith.select %109, %111, %107 : vector<8x5xi1>, vector<8x5xf32>
    %cst_21 = arith.constant 0.000000e+00 : f32
    %113 = vector.broadcast %cst_21 : f32 to vector<8x5xf32>
    %114 = arith.cmpf olt, %54, %113 : vector<8x5xf32>
    %cst_22 = arith.constant 0.000000e+00 : f32
    %115 = vector.broadcast %cst_22 : f32 to vector<8x5xf32>
    %116 = arith.subf %115, %112 : vector<8x5xf32>
    %117 = arith.select %114, %116, %112 : vector<8x5xi1>, vector<8x5xf32>
    %118 = arith.subf %7, %10 : vector<8x5xf32>
    %119 = arith.subf %8, %11 : vector<8x5xf32>
    %120 = arith.subf %9, %12 : vector<8x5xf32>
    %cst_23 = arith.constant 9.99999996E-13 : f32
    %121 = vector.broadcast %cst_23 : f32 to vector<8x5xf32>
    %122 = arith.maximumf %37, %121 : vector<8x5xf32>
    %123 = math.rsqrt %122 : vector<8x5xf32>
    %124 = arith.mulf %30, %123 : vector<8x5xf32>
    %125 = arith.mulf %31, %123 : vector<8x5xf32>
    %126 = arith.mulf %32, %123 : vector<8x5xf32>
    %127 = arith.mulf %19, %124 : vector<8x5xf32>
    %128 = arith.mulf %20, %125 : vector<8x5xf32>
    %129 = arith.addf %127, %128 : vector<8x5xf32>
    %130 = arith.mulf %21, %126 : vector<8x5xf32>
    %131 = arith.addf %129, %130 : vector<8x5xf32>
    %132 = arith.mulf %124, %131 : vector<8x5xf32>
    %133 = arith.mulf %125, %131 : vector<8x5xf32>
    %134 = arith.mulf %126, %131 : vector<8x5xf32>
    %135 = arith.subf %19, %132 : vector<8x5xf32>
    %136 = arith.subf %20, %133 : vector<8x5xf32>
    %137 = arith.subf %21, %134 : vector<8x5xf32>
    %138 = arith.mulf %118, %124 : vector<8x5xf32>
    %139 = arith.mulf %119, %125 : vector<8x5xf32>
    %140 = arith.addf %138, %139 : vector<8x5xf32>
    %141 = arith.mulf %120, %126 : vector<8x5xf32>
    %142 = arith.addf %140, %141 : vector<8x5xf32>
    %143 = arith.mulf %124, %142 : vector<8x5xf32>
    %144 = arith.mulf %125, %142 : vector<8x5xf32>
    %145 = arith.mulf %126, %142 : vector<8x5xf32>
    %146 = arith.subf %118, %143 : vector<8x5xf32>
    %147 = arith.subf %119, %144 : vector<8x5xf32>
    %148 = arith.subf %120, %145 : vector<8x5xf32>
    %149 = arith.mulf %125, %137 : vector<8x5xf32>
    %150 = arith.mulf %126, %136 : vector<8x5xf32>
    %151 = arith.subf %149, %150 : vector<8x5xf32>
    %152 = arith.mulf %126, %135 : vector<8x5xf32>
    %153 = arith.mulf %124, %137 : vector<8x5xf32>
    %154 = arith.subf %152, %153 : vector<8x5xf32>
    %155 = arith.mulf %124, %136 : vector<8x5xf32>
    %156 = arith.mulf %125, %135 : vector<8x5xf32>
    %157 = arith.subf %155, %156 : vector<8x5xf32>
    %158 = arith.mulf %151, %146 : vector<8x5xf32>
    %159 = arith.mulf %154, %147 : vector<8x5xf32>
    %160 = arith.addf %158, %159 : vector<8x5xf32>
    %161 = arith.mulf %157, %148 : vector<8x5xf32>
    %162 = arith.addf %160, %161 : vector<8x5xf32>
    %163 = arith.mulf %135, %146 : vector<8x5xf32>
    %164 = arith.mulf %136, %147 : vector<8x5xf32>
    %165 = arith.addf %163, %164 : vector<8x5xf32>
    %166 = arith.mulf %137, %148 : vector<8x5xf32>
    %167 = arith.addf %165, %166 : vector<8x5xf32>
    %168 = math.absf %167 : vector<8x5xf32>
    %169 = math.absf %162 : vector<8x5xf32>
    %170 = arith.cmpf ogt, %169, %168 : vector<8x5xf32>
    %171 = arith.select %170, %168, %169 : vector<8x5xi1>, vector<8x5xf32>
    %172 = arith.select %170, %169, %168 : vector<8x5xi1>, vector<8x5xf32>
    %cst_24 = arith.constant 9.99999996E-13 : f32
    %173 = vector.broadcast %cst_24 : f32 to vector<8x5xf32>
    %174 = arith.maximumf %172, %173 : vector<8x5xf32>
    %175 = arith.divf %171, %174 : vector<8x5xf32>
    %cst_25 = arith.constant 2.41421366 : f32
    %176 = vector.broadcast %cst_25 : f32 to vector<8x5xf32>
    %177 = arith.cmpf ogt, %175, %176 : vector<8x5xf32>
    %cst_26 = arith.constant 0.414213568 : f32
    %178 = vector.broadcast %cst_26 : f32 to vector<8x5xf32>
    %179 = arith.cmpf ogt, %175, %178 : vector<8x5xf32>
    %cst_27 = arith.constant dense<true> : vector<8x5xi1>
    %180 = arith.xori %177, %cst_27 : vector<8x5xi1>
    %181 = arith.andi %179, %180 : vector<8x5xi1>
    %cst_28 = arith.constant 0.785398185 : f32
    %cst_29 = arith.constant 0.000000e+00 : f32
    %182 = vector.broadcast %cst_28 : f32 to vector<8x5xf32>
    %183 = vector.broadcast %cst_29 : f32 to vector<8x5xf32>
    %184 = arith.select %181, %182, %183 : vector<8x5xi1>, vector<8x5xf32>
    %cst_30 = arith.constant 1.57079637 : f32
    %185 = vector.broadcast %cst_30 : f32 to vector<8x5xf32>
    %186 = arith.select %177, %185, %184 : vector<8x5xi1>, vector<8x5xf32>
    %cst_31 = arith.constant 9.99999996E-13 : f32
    %187 = vector.broadcast %cst_31 : f32 to vector<8x5xf32>
    %188 = arith.maximumf %175, %187 : vector<8x5xf32>
    %cst_32 = arith.constant -1.000000e+00 : f32
    %189 = vector.broadcast %cst_32 : f32 to vector<8x5xf32>
    %190 = arith.divf %189, %188 : vector<8x5xf32>
    %cst_33 = arith.constant 1.000000e+00 : f32
    %191 = vector.broadcast %cst_33 : f32 to vector<8x5xf32>
    %192 = arith.subf %175, %191 : vector<8x5xf32>
    %cst_34 = arith.constant 1.000000e+00 : f32
    %193 = vector.broadcast %cst_34 : f32 to vector<8x5xf32>
    %194 = arith.addf %175, %193 : vector<8x5xf32>
    %195 = arith.divf %192, %194 : vector<8x5xf32>
    %196 = arith.select %181, %195, %175 : vector<8x5xi1>, vector<8x5xf32>
    %197 = arith.select %177, %190, %196 : vector<8x5xi1>, vector<8x5xf32>
    %198 = arith.mulf %197, %197 : vector<8x5xf32>
    %cst_35 = arith.constant 0.0805374458 : f32
    %199 = vector.broadcast %cst_35 : f32 to vector<8x5xf32>
    %200 = arith.mulf %199, %198 : vector<8x5xf32>
    %cst_36 = arith.constant 0.138776854 : f32
    %201 = vector.broadcast %cst_36 : f32 to vector<8x5xf32>
    %202 = arith.subf %200, %201 : vector<8x5xf32>
    %203 = arith.mulf %202, %198 : vector<8x5xf32>
    %cst_37 = arith.constant 0.199777111 : f32
    %204 = vector.broadcast %cst_37 : f32 to vector<8x5xf32>
    %205 = arith.addf %203, %204 : vector<8x5xf32>
    %206 = arith.mulf %205, %198 : vector<8x5xf32>
    %cst_38 = arith.constant 0.333329499 : f32
    %207 = vector.broadcast %cst_38 : f32 to vector<8x5xf32>
    %208 = arith.subf %206, %207 : vector<8x5xf32>
    %209 = arith.mulf %208, %198 : vector<8x5xf32>
    %210 = arith.mulf %209, %197 : vector<8x5xf32>
    %211 = arith.addf %210, %197 : vector<8x5xf32>
    %212 = arith.addf %186, %211 : vector<8x5xf32>
    %cst_39 = arith.constant 1.57079637 : f32
    %213 = vector.broadcast %cst_39 : f32 to vector<8x5xf32>
    %214 = arith.subf %213, %212 : vector<8x5xf32>
    %215 = arith.select %170, %214, %212 : vector<8x5xi1>, vector<8x5xf32>
    %cst_40 = arith.constant 0.000000e+00 : f32
    %216 = vector.broadcast %cst_40 : f32 to vector<8x5xf32>
    %217 = arith.cmpf olt, %167, %216 : vector<8x5xf32>
    %cst_41 = arith.constant 3.14159274 : f32
    %218 = vector.broadcast %cst_41 : f32 to vector<8x5xf32>
    %219 = arith.subf %218, %215 : vector<8x5xf32>
    %220 = arith.select %217, %219, %215 : vector<8x5xi1>, vector<8x5xf32>
    %cst_42 = arith.constant 0.000000e+00 : f32
    %221 = vector.broadcast %cst_42 : f32 to vector<8x5xf32>
    %222 = arith.cmpf olt, %162, %221 : vector<8x5xf32>
    %cst_43 = arith.constant 0.000000e+00 : f32
    %223 = vector.broadcast %cst_43 : f32 to vector<8x5xf32>
    %224 = arith.subf %223, %220 : vector<8x5xf32>
    %225 = arith.select %222, %224, %220 : vector<8x5xi1>, vector<8x5xf32>
    %c0_44 = arith.constant 0 : index
    %c0_45 = arith.constant 0 : index
    %226 = vector.load %arg2[%c0_44, %c0_45] : memref<8x5xf32, #tpu.memory_space<vmem>>, vector<8x5xf32>
    tpu.vector_store %arg2[%c0_44, %c0_45], %29 {strides = array<i32>} : memref<8x5xf32, #tpu.memory_space<vmem>>, vector<8x5xf32>,
    %cst_46 = arith.constant 0.318309873 : f32
    %227 = vector.broadcast %cst_46 : f32 to vector<8x5xf32>
    %228 = arith.mulf %117, %227 : vector<8x5xf32>
    %c0_47 = arith.constant 0 : index
    %c0_48 = arith.constant 0 : index
    %229 = vector.load %arg3[%c0_47, %c0_48] : memref<8x5xf32, #tpu.memory_space<vmem>>, vector<8x5xf32>
    tpu.vector_store %arg3[%c0_47, %c0_48], %228 {strides = array<i32>} : memref<8x5xf32, #tpu.memory_space<vmem>>, vector<8x5xf32>,
    %cst_49 = arith.constant 3.14159274 : f32
    %230 = vector.broadcast %cst_49 : f32 to vector<8x5xf32>
    %231 = arith.addf %225, %230 : vector<8x5xf32>
    %cst_50 = arith.constant 0.159154937 : f32
    %232 = vector.broadcast %cst_50 : f32 to vector<8x5xf32>
    %233 = arith.mulf %231, %232 : vector<8x5xf32>
    %c0_51 = arith.constant 0 : index
    %c0_52 = arith.constant 0 : index
    %234 = vector.load %arg4[%c0_51, %c0_52] : memref<8x5xf32, #tpu.memory_space<vmem>>, vector<8x5xf32>
    tpu.vector_store %arg4[%c0_51, %c0_52], %233 {strides = array<i32>} : memref<8x5xf32, #tpu.memory_space<vmem>>, vector<8x5xf32>,
    %235 = math.log %29 : vector<8x5xf32>
    %236 = math.log %54 : vector<8x5xf32>
    %cst_53 = arith.constant 9.99999996E-13 : f32
    %237 = vector.broadcast %cst_53 : f32 to vector<8x5xf32>
    %238 = arith.maximumf %37, %237 : vector<8x5xf32>
    %239 = math.log %238 : vector<8x5xf32>
    %cst_54 = arith.constant 5.000000e-01 : f32
    %240 = vector.broadcast %cst_54 : f32 to vector<8x5xf32>
    %241 = arith.mulf %240, %239 : vector<8x5xf32>
    %242 = arith.addf %235, %236 : vector<8x5xf32>
    %243 = arith.subf %242, %241 : vector<8x5xf32>
    %cst_55 = arith.constant 0.000000e+00 : f32
    %244 = vector.broadcast %cst_55 : f32 to vector<8x5xf32>
    %245 = arith.subf %244, %243 : vector<8x5xf32>
    %cst_56 = arith.constant dense<0.000000e+00> : vector<8xf32>
    %246 = vector.multi_reduction <add>, %245, %cst_56 [1] : vector<8x5xf32> to vector<8xf32>
    %247 = vector.shape_cast %246 : vector<8xf32> to vector<8x1xf32>
    %c0_57 = arith.constant 0 : index
    %c0_58 = arith.constant 0 : index
    %248 = vector.load %arg5[%c0_57, %c0_58] : memref<8x1xf32, #tpu.memory_space<vmem>>, vector<8x1xf32>
    tpu.vector_store %arg5[%c0_57, %c0_58], %247 {strides = array<i32>} : memref<8x1xf32, #tpu.memory_space<vmem>>, vector<8x1xf32>,
    return
  }
  func.func @transform_0(%arg0: i32) -> (i32, i32, i32) {
    %c0_i32 = arith.constant 0 : i32
    %c0_i32_0 = arith.constant 0 : i32
    %c0_i32_1 = arith.constant 0 : i32
    return %c0_i32, %arg0, %c0_i32_0 : i32, i32, i32
  }
  func.func @transform_1(%arg0: i32) -> (i32, i32) {
    %c0_i32 = arith.constant 0 : i32
    %c0_i32_0 = arith.constant 0 : i32
    return %arg0, %c0_i32 : i32, i32
  }
  func.func @transform_2(%arg0: i32) -> (i32, i32) {
    %c0_i32 = arith.constant 0 : i32
    %c0_i32_0 = arith.constant 0 : i32
    return %arg0, %c0_i32 : i32, i32
  }
  func.func @transform_3(%arg0: i32) -> (i32, i32) {
    %c0_i32 = arith.constant 0 : i32
    %c0_i32_0 = arith.constant 0 : i32
    return %arg0, %c0_i32 : i32, i32
  }
  func.func @transform_4(%arg0: i32) -> (i32, i32) {
    %c0_i32 = arith.constant 0 : i32
    %c0_i32_0 = arith.constant 0 : i32
    return %arg0, %c0_i32 : i32, i32
  }
}

</mosaic_0001>

<bundles_post_ra>
// kernel: _forward_impl.1
= control target key start
LH: loop header
LB: loop body
LE: loop exit
PB: predicated region body
PF: predicated region fallthrough
CT: control target
= control target key end

     0   :  { %s431_s19 = smov 127   ;;  %s433_s22 = smov 2   ;;  %vm436_vm6 = vmmov 1   ;;  %s704_s0 = inlined_call_operand.vmem [shape: f32[3,8,8], index: 0, kind: input, shape index: {}]   ;;  %s705_s1 = inlined_call_operand.vmem [shape: f32[8,5], index: 1, kind: output, shape index: {0}]   ;;  %s706_s2 = inlined_call_operand.vmem [shape: f32[8,5], index: 2, kind: output, shape index: {1}]   ;;  %s707_s4 = inlined_call_operand.vmem [shape: f32[8,1], index: 4, kind: output, shape index: {3}]   ;;  %s708_s3 = inlined_call_operand.vmem [shape: f32[8,5], index: 3, kind: output, shape index: {2}]  }
   0x1   :  { %v12_v0 = vld [vmem:[%s704_s0] sm:$0xff]  ;;  %v14_v1 = vld [vmem:[%s704_s0 + $0x10] sm:$0xff]  ;;  %v13_v2 = vld [vmem:[%s704_s0 + $0x8] sm:$0xff]  ;;  %s432_s0 = smov 1   ;;  %s434_s23 = smov 126  }
   0x2   :  { %43 = vrot.lane.b32.xlu0 %v12_v0, %s431_s19  ;;  %51 = vrot.lane.b32.xlu1 %v14_v1, %s431_s19  ;;  %s435_s24 = smov 3   ;;  %s438_s25 = smov 125  }
   0x6   :  { %47 = vrot.lane.b32.xlu0 %v13_v2, %s431_s19 }
  0x74   :  { %v44_v3 = vpop.permute.xlu0 %43  ;;  %v52_v4 = vpop.permute.xlu1 %51 }
  0x75   :  { %v476_v5 = vsub.f32 %v12_v0, %v44_v3  ;;  %v478_v6 = vsub.f32 %v14_v1, %v52_v4 }
  0x77   :  { %v55_v9 = vmul.f32 %v476_v5, %v476_v5  ;;  %v58_v11 = vmul.f32 %v478_v6, %v478_v6 }
  0x78   :  { %v48_v7 = vpop.permute.xlu0 %47 }
  0x79   :  { %v480_v8 = vsub.f32 %v13_v2, %v48_v7 }
  0x7b   :  { %v56_v10 = vmul.f32 %v480_v8, %v480_v8 }
  0x7d   :  { %v57_v12 = vadd.f32 %v56_v10, %v55_v9 }
  0x7f   :  { %v488_v13 = vadd.f32 %v58_v11, %v57_v12 }
  0x81   :  { %v141_v14 = vmax.f32 %v488_v13, 1e-12 }
  0x83   :  { %407 = vrsqrt.f32 %v141_v14 }
  0x84   :  { %409 = vlog2.f32 %v141_v14 }
  0x90   :  { %v408_v15 = vpop.eup %407 }
  0x91   :  { %v494_v16 = vmul.f32 %v408_v15, %v480_v8  ;;  %v497_v17 = vmul.f32 %v408_v15, %v476_v5  ;;  %v504_v18 = vmul.f32 %v408_v15, %v478_v6 }
  0x93   :  { %189 = vrot.lane.b32.xlu0 %v494_v16, %s431_s19  ;;  %185 = vrot.lane.b32.xlu1 %v497_v17, %s431_s19 }
  0x97   :  { %16 = vrot.lane.b32.xlu0 %v12_v0, %s432_s0  ;;  %194 = vrot.lane.b32.xlu1 %v504_v18, %s431_s19 }
  0x9b   :  { %26 = vrot.lane.b32.xlu0 %v14_v1, %s432_s0  ;;  %21 = vrot.lane.b32.xlu1 %v13_v2, %s432_s0 }
  0x9f   :  { %152 = vrot.lane.b32.xlu0 %v494_v16, %s433_s22  ;;  %147 = vrot.lane.b32.xlu1 %v497_v17, %s433_s22 }
  0xa3   :  { %158 = vrot.lane.b32.xlu1 %v504_v18, %s433_s22 }
 0x105   :  { %v190_v19 = vpop.permute.xlu0 %189  ;;  %v186_v20 = vpop.permute.xlu1 %185 }
 0x106   :  { %v192_v21 = vmul.f32 %v190_v19, %v480_v8  ;;  %v188_v22 = vmul.f32 %v186_v20, %v476_v5 }
 0x108   :  { %v193_v25 = vadd.f32 %v192_v21, %v188_v22 }
 0x109   :  { %v17_v23 = vpop.permute.xlu0 %16  ;;  %v195_v24 = vpop.permute.xlu1 %194 }
 0x10a   :  { %v197_v26 = vmul.f32 %v195_v24, %v478_v6  ;;  %v520_v30 = vsub.f32 %v12_v0, %v17_v23 }
 0x10c   :  { %v198_v27 = vadd.f32 %v197_v26, %v193_v25 }
 0x10d   :  { %v27_v28 = vpop.permute.xlu0 %26  ;;  %v22_v29 = vpop.permute.xlu1 %21 }
 0x10e   :  { %v522_v31 = vsub.f32 %v13_v2, %v22_v29  ;;  %200 = vrot.lane.b32.xlu0 %v198_v27, %s432_s0  ;;  %v525_v34 = vsub.f32 %v14_v1, %v27_v28 }
 0x111   :  { %v153_v32 = vpop.permute.xlu0 %152  ;;  %v148_v33 = vpop.permute.xlu1 %147 }
 0x112   :  { %v155_v35 = vmul.f32 %v153_v32, %v522_v31  ;;  %v150_v36 = vmul.f32 %v148_v33, %v520_v30 }
 0x114   :  { %v156_v38 = vadd.f32 %v155_v35, %v150_v36 }
 0x115   :  { %v159_v37 = vpop.permute.xlu1 %158 }
 0x116   :  { %v161_v39 = vmul.f32 %v159_v37, %v525_v34 }
 0x118   :  { %v162_v40 = vadd.f32 %v161_v39, %v156_v38 }
 0x11a   :  { %164 = vrot.lane.b32.xlu1 %v162_v40, %s434_s23 }
 0x180   :  { %v201_v41 = vpop.permute.xlu0 %200 }
 0x181   :  { %v203_v42 = vmul.f32 %v201_v41, %v497_v17  ;;  %v204_v43 = vmul.f32 %v201_v41, %v494_v16  ;;  %v205_v44 = vmul.f32 %v201_v41, %v504_v18 }
 0x183   :  { %207 = vrot.lane.b32.xlu0 %v203_v42, %s431_s19  ;;  %212 = vrot.lane.b32.xlu1 %v204_v43, %s431_s19 }
 0x187   :  { %217 = vrot.lane.b32.xlu0 %v205_v44, %s431_s19 }
 0x18c   :  { %v165_v45 = vpop.permute.xlu1 %164 }
 0x18d   :  { %v167_v46 = vmul.f32 %v165_v45, %v497_v17  ;;  %v168_v47 = vmul.f32 %v165_v45, %v494_v16  ;;  %v169_v48 = vmul.f32 %v165_v45, %v504_v18 }
 0x18f   :  { %176 = vrot.lane.b32.xlu0 %v168_v47, %s433_s22  ;;  %171 = vrot.lane.b32.xlu1 %v167_v46, %s433_s22 }
 0x193   :  { %181 = vrot.lane.b32.xlu1 %v169_v48, %s433_s22 }
 0x1f5   :  { %v208_v49 = vpop.permute.xlu0 %207  ;;  %v213_v50 = vpop.permute.xlu1 %212 }
 0x1f6   :  { %v210_v51 = vsub.f32 %v476_v5, %v208_v49  ;;  %v215_v52 = vsub.f32 %v480_v8, %v213_v50  ;;  %v33_v50 = vmul.f32 %v525_v34, %v525_v34 }
 0x1f8   :  { %259 = vrot.lane.b32.xlu0 %v210_v51, %s435_s24  ;;  %263 = vrot.lane.b32.xlu1 %v215_v52, %s435_s24 }
 0x1f9   :  { %v218_v53 = vpop.permute.xlu0 %217 }
 0x1fa   :  { %v220_v54 = vsub.f32 %v478_v6, %v218_v53 }
 0x1fc   :  { %268 = vrot.lane.b32.xlu0 %v220_v54, %s435_s24 }
 0x201   :  { %v177_v55 = vpop.permute.xlu0 %176  ;;  %v172_v56 = vpop.permute.xlu1 %171 }
 0x202   :  { %v179_v57 = vsub.f32 %v522_v31, %v177_v55  ;;  %v174_v60 = vsub.f32 %v520_v30, %v172_v56 }
 0x204   :  { %227 = vrot.lane.b32.xlu0 %v179_v57, %s434_s23 }
 0x205   :  { %v182_v58 = vpop.permute.xlu1 %181 }
 0x206   :  { %v184_v59 = vsub.f32 %v525_v34, %v182_v58 }
 0x208   :  { %243 = vrot.lane.b32.xlu0 %v210_v51, %s432_s0  ;;  %222 = vrot.lane.b32.xlu1 %v184_v59, %s434_s23 }
 0x20c   :  { %254 = vrot.lane.b32.xlu0 %v220_v54, %s432_s0  ;;  %233 = vrot.lane.b32.xlu1 %v174_v60, %s434_s23 }
 0x210   :  { %61 = vrot.lane.b32.xlu0 %v478_v6, %s433_s22  ;;  %248 = vrot.lane.b32.xlu1 %v215_v52, %s432_s0  ;;  %v410_v6 = vpop.eup %409 }
 0x211   :  { %v359_v9 = vmul.f32 0.6931472, %v410_v6 }
 0x214   :  { %72 = vrot.lane.b32.xlu0 %v476_v5, %s433_s22  ;;  %v360_v5 = vmul.f32 0.5, %v359_v9 }
 0x26a   :  { %v260_v61 = vpop.permute.xlu0 %259  ;;  %v264_v62 = vpop.permute.xlu1 %263 }
 0x26b   :  { %v262_v63 = vmul.f32 %v260_v61, %v174_v60  ;;  %v266_v0 = vmul.f32 %v264_v62, %v179_v57 }
 0x26d   :  { %v267_v2 = vadd.f32 %v266_v0, %v262_v63 }
 0x26e   :  { %v269_v1 = vpop.permute.xlu0 %268 }
 0x26f   :  { %v271_v3 = vmul.f32 %v269_v1, %v184_v59 }
 0x271   :  { %v561_v4 = vadd.f32 %v271_v3, %v267_v2 }
 0x273   :  { %v273_v7 = vand.u32 2147483647, %v561_v4 }
 0x275   :  { %276 = vrot.lane.b32.xlu1 %v273_v7, %s434_s23 }
 0x276   :  { %v228_v11 = vpop.permute.xlu0 %227 }
 0x277   :  { %v230_v20 = vmul.f32 %v228_v11, %v504_v18  ;;  %v239_v25 = vmul.f32 %v228_v11, %v497_v17 }
 0x279   :  { %66 = vrot.lane.b32.xlu1 %v480_v8, %s433_s22 }
 0x27a   :  { %v223_v10 = vpop.permute.xlu1 %222  ;;  %v244_v13 = vpop.permute.xlu0 %243 }
 0x27b   :  { %v225_v15 = vmul.f32 %v223_v10, %v494_v16  ;;  %v237_v19 = vmul.f32 %v223_v10, %v497_v17  ;;  %v31_v17 = vmul.f32 %v522_v31, %v522_v31 }
 0x27d   :  { %363 = vrot.lane.b32.xlu1 %v360_v5, %s433_s22  ;;  %v231_v23 = vsub.f32 %v225_v15, %v230_v20 }
 0x27e   :  { %v234_v12 = vpop.permute.xlu1 %233  ;;  %v255_v24 = vpop.permute.xlu0 %254 }
 0x27f   :  { %v236_v14 = vmul.f32 %v234_v12, %v504_v18  ;;  %v240_v8 = vmul.f32 %v234_v12, %v494_v16  ;;  %v246_v28 = vmul.f32 %v244_v13, %v231_v23  ;;  %v30_v16 = vmul.f32 %v520_v30, %v520_v30 }
 0x281   :  { %v238_v21 = vsub.f32 %v236_v14, %v237_v19  ;;  %v241_v27 = vsub.f32 %v239_v25, %v240_v8  ;;  %v32_v51 = vadd.f32 %v31_v17, %v30_v16 }
 0x282   :  { %v249_v22 = vpop.permute.xlu1 %248  ;;  %v62_v29 = vpop.permute.xlu0 %61 }
 0x283   :  { %v251_v26 = vmul.f32 %v249_v22, %v238_v21  ;;  %v257_v33 = vmul.f32 %v255_v24, %v241_v27  ;;  %v76_v39 = vmul.f32 %v62_v29, %v520_v30  ;;  %v64_v42 = vmul.f32 %v62_v29, %v522_v31 }
 0x284   :  { %v97_v52 = vmul.f32 %v62_v29, %v525_v34  ;;  %v34_v59 = vadd.f32 %v33_v50, %v32_v51 }
 0x285   :  { %v252_v32 = vadd.f32 %v251_v26, %v246_v28 }
 0x286   :  { %v73_v36 = vpop.permute.xlu0 %72 }
 0x287   :  { %v574_v35 = vadd.f32 %v257_v33, %v252_v32  ;;  %v75_v18 = vmul.f32 %v73_v36, %v525_v34  ;;  %v79_v44 = vmul.f32 %v73_v36, %v522_v31  ;;  %v94_v45 = vmul.f32 %v73_v36, %v520_v30 }
 0x289   :  { %v577_v37 = vand.u32 2147483647, %v574_v35  ;;  %v77_v43 = vsub.f32 %v75_v18, %v76_v39 }
 0x28b   :  { %v82_v56 = vmul.f32 %v77_v43, %v77_v43 }
 0x2e7   :  { %v580_v38 = vpop.permute.xlu1 %276 }
 0x2e8   :  { %vm279_vm0 = vcmp.gt.f32.partialorder %v577_v37, %v580_v38 }
 0x2e9   :  { %v281_v40 = vsel %vm279_vm0, %v577_v37, %v580_v38 }
 0x2ea   :  { %v282_v41 = vmax.f32 %v281_v40, 1e-12 }
 0x2eb   :  { %v67_v46 = vpop.permute.xlu1 %66 }
 0x2ec   :  { %411 = vrcp.f32 %v282_v41  ;;  %v69_v47 = vmul.f32 %v67_v46, %v525_v34  ;;  %v78_v48 = vmul.f32 %v67_v46, %v520_v30  ;;  %v95_v49 = vmul.f32 %v67_v46, %v522_v31 }
 0x2ed   :  { %v35_v30 = vmax.f32 %v34_v59, 1e-12  ;;  %v280_v34 = vsel %vm279_vm0, %v580_v38, %v577_v37 }
 0x2ee   :  { %v70_v53 = vsub.f32 %v64_v42, %v69_v47  ;;  %v80_v54 = vsub.f32 %v78_v48, %v79_v44  ;;  %v96_v55 = vadd.f32 %v95_v49, %v94_v45  ;;  %v437_v44 = vmov 0.0  }
 0x2ef   :  { %vm38_vm4 = vcmp.eq.f32.partialorder %v35_v30, inf  ;;  %vm40_vm8 = vcmp.eq.f32.partialorder %v35_v30, 0.0  ;;  %v41_v20 = vand.u32 2147483648, %v35_v30 }
 0x2f0   :  { %v81_v57 = vmul.f32 %v70_v53, %v70_v53  ;;  %v603_v58 = vadd.f32 %v97_v52, %v96_v55  ;;  %v84_v61 = vmul.f32 %v80_v54, %v80_v54 }
 0x2f2   :  { %v83_v60 = vadd.f32 %v82_v56, %v81_v57  ;;  %v616_v10 = vand.u32 2147483647, %v603_v58  ;;  %vm135_vm15 = vcmp.lt.f32.partialorder %v603_v58, 0.0 }
 0x2f4   :  { %v85_v62 = vadd.f32 %v84_v61, %v83_v60  ;;  %v364_v61 = vpop.permute.xlu1 %363 }
 0x2f6   :  { %v86_v63 = vmax.f32 %v85_v62, 1e-12 }
 0x2f8   :  { %413 = vrsqrt.f32 %v86_v63  ;;  %vm89_vm1 = vcmp.eq.f32.partialorder %v86_v63, inf  ;;  %v92_v9 = vand.u32 2147483648, %v86_v63  ;;  %vm91_vm3 = vcmp.eq.f32.partialorder %v86_v63, 0.0 }
 0x2f9   :  { %v412_v31 = vpop.eup %411  ;;  %415 = vrsqrt.f32 %v35_v30 }
 0x2fa   :  { %v610_v0 = vmul.f32 %v412_v31, %v280_v34 }
 0x2fc   :  { %v295_v1 = vadd.f32 1.0, %v610_v0  ;;  %v291_v2 = vmax.f32 %v610_v0, 1e-12  ;;  %vm285_vm2 = vcmp.gt.f32.partialorder %v610_v0, 2.4142137  ;;  %v396_v14 = vadd.f32 -1.0, %v610_v0 }
 0x2fd   :  { %vm286_vm5 = vcmp.gt.f32.partialorder %v610_v0, 0.41421357  ;;  %vm287_vm7 = vmxor %vm285_vm2, %vm436_vm6 }
 0x2fe   :  { %417 = vrcp.f32 %v295_v1  ;;  %vm640_vm10 = vmand %vm286_vm5, %vm287_vm7 }
 0x2ff   :  { %419 = vrcp.f32 %v291_v2  ;;  %v289_v45 = vsel %vm640_vm10, 0.7853982, %v437_v44 }
 0x300   :  { %v290_v54 = vsel %vm285_vm2, 1.5707964, %v289_v45 }
 0x305   :  { %v414_v3 = vpop.eup %413 }
 0x306   :  { %v416_v7 = vpop.eup %415  ;;  %v88_v6 = vmul.f32 %v414_v3, %v86_v63 }
 0x307   :  { %v37_v11 = vmul.f32 %v416_v7, %v35_v30 }
 0x308   :  { %v90_v5 = vsel %vm89_vm1, %v86_v63, %v88_v6  ;;  %vm313_vm1 = vcmp.lt.f32.partialorder %v561_v4, 0.0 }
 0x309   :  { %v618_v12 = vsel %vm91_vm3, %v92_v9, %v90_v5  ;;  %v39_v22 = vsel %vm38_vm4, %v35_v30, %v37_v11  ;;  %vm324_vm3 = vcmp.lt.f32.partialorder %v574_v35, 0.0  ;;  %vm375_vm4 = vcmask 7168  }
 0x30a   :  { %v621_v13 = vand.u32 2147483647, %v618_v12  ;;  %v649_v29 = vsel %vm40_vm8, %v41_v20, %v39_v22 }
 0x30b   :  { %v418_v15 = vpop.eup %417 }
 0x30c   :  { %v420_v19 = vpop.eup %419  ;;  %vm101_vm9 = vcmp.gt.f32.partialorder %v621_v13, %v616_v10  ;;  %v297_v21 = vmul.f32 %v418_v15, %v396_v14 }
 0x30d   :  { %v102_v23 = vsel %vm101_vm9, %v616_v10, %v621_v13  ;;  %v103_v24 = vsel %vm101_vm9, %v621_v13, %v616_v10  ;;  %v293_v25 = vmul.f32 -1.0, %v420_v19 }
 0x30e   :  { %v104_v26 = vmax.f32 %v103_v24, 1e-12  ;;  %v298_v27 = vsel %vm640_vm10, %v297_v21, %v610_v0 }
 0x30f   :  { %v299_v28 = vsel %vm285_vm2, %v293_v25, %v298_v27  ;;  %vm339_vm2 = vcmask 39936  }
 0x310   :  { %421 = vrcp.f32 %v104_v26  ;;  %v300_v32 = vmul.f32 %v299_v28, %v299_v28 }
 0x311   :  { %423 = vlog2.f32 %v618_v12 }
 0x312   :  { %v301_v33 = vmul.f32 0.080537446, %v300_v32  ;;  %425 = vlog2.f32 %v649_v29 }
 0x314   :  { %v397_v36 = vadd.f32 -0.13877685, %v301_v33 }
 0x316   :  { %v303_v18 = vmul.f32 %v397_v36, %v300_v32 }
 0x318   :  { %v304_v16 = vadd.f32 0.19977711, %v303_v18 }
 0x31a   :  { %v305_v17 = vmul.f32 %v304_v16, %v300_v32 }
 0x31c   :  { %v398_v39 = vadd.f32 -0.3333295, %v305_v17 }
 0x31d   :  { %v422_v40 = vpop.eup %421 }
 0x31e   :  { %v424_v41 = vpop.eup %423  ;;  %v106_v42 = vmul.f32 %v422_v40, %v102_v23  ;;  %v307_v43 = vmul.f32 %v398_v39, %v300_v32 }
 0x31f   :  { %v426_v46 = vpop.eup %425  ;;  %v357_v49 = vmul.f32 0.6931472, %v424_v41 }
 0x320   :  { %v308_v47 = vmul.f32 %v307_v43, %v299_v28  ;;  %vm107_vm11 = vcmp.gt.f32.partialorder %v106_v42, 2.4142137  ;;  %vm108_vm12 = vcmp.gt.f32.partialorder %v106_v42, 0.41421357  ;;  %v113_v48 = vmax.f32 %v106_v42, 1e-12 }
 0x321   :  { %vm109_vm13 = vmxor %vm107_vm11, %vm436_vm6  ;;  %v117_v50 = vadd.f32 1.0, %v106_v42  ;;  %v355_v53 = vmul.f32 0.6931472, %v426_v46  ;;  %v393_v0 = vadd.f32 -1.0, %v106_v42 }
 0x322   :  { %v309_v51 = vadd.f32 %v308_v47, %v299_v28  ;;  %vm657_vm14 = vmand %vm108_vm12, %vm109_vm13  ;;  %427 = vrcp.f32 %v113_v48 }
 0x323   :  { %v111_v55 = vsel %vm657_vm14, 0.7853982, %v437_v44  ;;  %429 = vrcp.f32 %v117_v50  ;;  %v361_v59 = vadd.f32 %v357_v49, %v355_v53 }
 0x324   :  { %v310_v56 = vadd.f32 %v309_v51, %v290_v54  ;;  %v112_v57 = vsel %vm107_vm11, 1.5707964, %v111_v55 }
 0x325   :  { %v366_v30 = vsub.f32 %v361_v59, %v364_v61 }
 0x326   :  { %v311_v60 = vsub.f32 1.5707964, %v310_v56 }
 0x327   :  { %v367_v31 = vsub.f32 0.0, %v366_v30 }
 0x328   :  { %v312_v62 = vsel %vm279_vm0, %v311_v60, %v310_v56  ;;  %vm138_vm0 = vcmp.lt.f32.partialorder %v618_v12, 0.0 }
 0x329   :  { %320 = vrot.lane.b32.xlu1 %v312_v62, %s433_s22  ;;  %v314_v63 = vsub.f32 3.1415927, %v312_v62 }
 0x32b   :  { %316 = vrot.lane.b32.xlu0 %v314_v63, %s433_s22 }
 0x32f   :  { %v428_v34 = vpop.eup %427  ;;  %369 = vrot.lane.b32.xlu0 %v367_v31, %s438_s25 }
 0x330   :  { %v430_v1 = vpop.eup %429  ;;  %v115_v2 = vmul.f32 -1.0, %v428_v34 }
 0x331   :  { %v119_v3 = vmul.f32 %v430_v1, %v393_v0 }
 0x333   :  { %v120_v7 = vsel %vm657_vm14, %v119_v3, %v106_v42 }
 0x334   :  { %v121_v37 = vsel %vm107_vm11, %v115_v2, %v120_v7 }
 0x335   :  { %v122_v38 = vmul.f32 %v121_v37, %v121_v37 }
 0x337   :  { %v123_v6 = vmul.f32 0.080537446, %v122_v38 }
 0x339   :  { %v394_v9 = vadd.f32 -0.13877685, %v123_v6 }
 0x33b   :  { %v125_v5 = vmul.f32 %v394_v9, %v122_v38 }
 0x33d   :  { %v126_v11 = vadd.f32 0.19977711, %v125_v5 }
 0x33f   :  { %v127_v14 = vmul.f32 %v126_v11, %v122_v38 }
 0x341   :  { %v395_v15 = vadd.f32 -0.3333295, %v127_v14 }
 0x343   :  { %v129_v19 = vmul.f32 %v395_v15, %v122_v38 }
 0x345   :  { %v130_v20 = vmul.f32 %v129_v19, %v121_v37 }
 0x347   :  { %v131_v21 = vadd.f32 %v130_v20, %v121_v37 }
 0x349   :  { %v132_v22 = vadd.f32 %v131_v21, %v112_v57 }
 0x34b   :  { %v133_v23 = vsub.f32 1.5707964, %v132_v22 }
 0x34d   :  { %v134_v24 = vsel %vm101_vm9, %v133_v23, %v132_v22 }
 0x34e   :  { %v136_v8 = vsub.f32 3.1415927, %v134_v24 }
 0x350   :  { %v137_v25 = vsel %vm135_vm15, %v136_v8, %v134_v24 }
 0x351   :  { %v139_v26 = vsub.f32 0.0, %v137_v25 }
 0x353   :  { %v140_v27 = vsel %vm138_vm0, %v139_v26, %v137_v25 }
 0x354   :  { %v341_v10 = vmul.f32 0.31830987, %v140_v27 }
 0x39b   :  { %v321_v28 = vpop.permute.xlu1 %320 }
 0x39d   :  { %v317_v32 = vpop.permute.xlu0 %316 }
 0x39e   :  { %v323_v33 = vsel %vm313_vm1, %v317_v32, %v321_v28 }
 0x39f   :  { %331 = vrot.lane.b32.xlu0 %v323_v33, %s434_s23  ;;  %v325_v36 = vsub.f32 0.0, %v323_v33 }
 0x3a1   :  { %327 = vrot.lane.b32.xlu1 %v325_v36, %s434_s23  ;;  %v370_v58 = vpop.permute.xlu0 %369 }
 0x3a2   :  { %v372_v12 = vsel %vm339_vm2, %v370_v58, 0.0 }
 0x3a3   :  { %336 = vrot.lane.b32.xlu0 %v649_v29, %s438_s25 }
 0x3a7   :  { %343 = vrot.lane.b32.xlu0 %v341_v10, %s438_s25 }
 0x3c5   :  { %373 = vadd.xlane.f32.xlu1 %v372_v12 }
 0x411   :  { %v332_v13 = vpop.permute.xlu0 %331 }
 0x413   :  { %v328_v4 = vpop.permute.xlu1 %327 }
 0x414   :  { %v334_v18 = vsel %vm324_vm3, %v328_v4, %v332_v13 }
 0x415   :  { %v347_v16 = vadd.f32 3.1415927, %v334_v18  ;;  %v337_v17 = vpop.permute.xlu0 %336 }
 0x416   :  { %340 = vst.msk [vmem:[%s705_s1] sm:$0xff] %vm339_vm2, %v337_v17 }
 0x417   :  { %v348_v29 = vmul.f32 0.15915494, %v347_v16 }
 0x419   :  { %v344_v39 = vpop.permute.xlu0 %343  ;;  %350 = vrot.lane.b32.xlu0 %v348_v29, %s431_s19 }
 0x41a   :  { %346 = vst.msk [vmem:[%s706_s2] sm:$0xff] %vm339_vm2, %v344_v39 }
 0x44e   :  { %v374_v35 = vpop.xlane.xlu1 %373 }
 0x44f   :  { %376 = vst.msk [vmem:[%s707_s4] sm:$0xff] %vm375_vm4, %v374_v35 }
 0x48b   :  { %v351_v40 = vpop.permute.xlu0 %350 }
 0x48c   :  { %353 = vst.msk [vmem:[%s708_s3] sm:$0xff] %vm339_vm2, %v351_v40 }

</bundles_post_ra>
